<compile_context>
chip_gen: v5e
topology: v5e:2x2
jax: 0.10.0
libtpu: 0.0.40
codegen_flags: <defaults>
</compile_context>

<pallas_src>
import jax
import jax.numpy as jnp
from jax.experimental import pallas as pl
from jax.experimental.pallas import tpu as pltpu


def _embedding_gather_kernel(ids_ref, tok_row_ref, pos_row_ref,
                             emb_ref, tok_ref):
    # ids_ref:     (B, T) int32 in SMEM (scalar prefetch; consumed only by the
    #              index_maps, not by the body).
    # tok_row_ref: (1, 1, E) f32 -- token-table row gathered for this (b, t).
    # pos_row_ref: (1, 1, E) f32 -- position-table row t.
    # emb_ref:     (1, 1, E) f32 output block of the flat (B*T, 1, E) slab.
    # tok_ref:     (1, 1, E) f32 output block of the flat (B*T, 1, E) slab.
    tok = tok_row_ref[...]
    tok_ref[...] = tok
    emb_ref[...] = tok + pos_row_ref[...]


def embedding_forward(ids, tok_table, pos_table):
    """ids: (B, T) int. Returns (batInpEmb, batInpTokEmb, batPosEmb)."""
    B, T = ids.shape
    V, E = tok_table.shape
    P, _ = pos_table.shape
    assert T <= P, "sequence length must not exceed numPos"
    N = B * T

    # PyTorch nn.Embedding raises on out-of-range ids; we clamp instead so the
    # data-dependent row DMA can never go out of bounds.
    # TODO(synk): no in-kernel equivalent of PyTorch's index-out-of-range error.
    ids = jnp.clip(ids.astype(jnp.int32), 0, V - 1)

    # View tables as (rows, 1, E): per-row (1, 1, E) blocks then have their
    # last two dims equal to the full array dims (TPU layout rule), with the
    # embedding dim on the lane axis.
    tok_tab3 = tok_table.reshape(V, 1, E)
    pos_tab3 = pos_table.reshape(P, 1, E)

    grid_spec = pltpu.PrefetchScalarGridSpec(
        num_scalar_prefetch=1,          # ids land in SMEM, drive the index_maps
        grid=(B, T),                    # one gathered row per grid step
        in_specs=[
            # Token-embedding row gather: ids[b, t] selects the (1, 1, E) block.
            pl.BlockSpec((1, 1, E), lambda b, t, ids_ref: (ids_ref[b, t], 0, 0)),
            # Position-embedding row t (rows >= T are never DMA'd).
            pl.BlockSpec((1, 1, E), lambda b, t, ids_ref: (t, 0, 0)),
        ],
        out_specs=(
            pl.BlockSpec((1, 1, E), lambda b, t, ids_ref: (b * T + t, 0, 0)),
            pl.BlockSpec((1, 1, E), lambda b, t, ids_ref: (b * T + t, 0, 0)),
        ),
    )

    emb_flat, tok_flat = pl.pallas_call(
        _embedding_gather_kernel,
        out_shape=(
            jax.ShapeDtypeStruct((N, 1, E), jnp.float32),   # batInpEmb   (flat)
            jax.ShapeDtypeStruct((N, 1, E), jnp.float32),   # batInpTokEmb(flat)
        ),
        grid_spec=grid_spec,
        compiler_params=pltpu.CompilerParams(
            dimension_semantics=("parallel", "parallel")),
    )(ids, tok_tab3, pos_tab3)

    emb = emb_flat.reshape(B, T, E)        # free metadata reshapes in JAX
    tok_emb = tok_flat.reshape(B, T, E)
    pos_emb = pos_table[:T]                # arange(T) lookup == contiguous slice
    return emb, tok_emb, pos_emb


if __name__ == "__main__":
    # Synthetic "text" to define the character vocabulary (as in the module).
    text = "hello pallas tpu kernels, tiny character gpt!"
    chars = sorted(list(set(text)))
    vocSiz = len(chars)

    embDim = 128   # E: chosen lane-dense (multiple of 128) per the perf review
    numPos = 16    # maximum block size (position table rows)
    B, T = 2, 8    # small example shapes

    key = jax.random.PRNGKey(0)
    k_tok, k_pos, k_ids = jax.random.split(key, 3)

    # nn.Embedding default init ~ N(0, 1)
    tok_table = jax.random.normal(k_tok, (vocSiz, embDim), dtype=jnp.float32)
    pos_table = jax.random.normal(k_pos, (numPos, embDim), dtype=jnp.float32)
    ids = jax.random.randint(k_ids, (B, T), 0, vocSiz, dtype=jnp.int32)

    emb, tok_emb, pos_emb = embedding_forward(ids, tok_table, pos_table)
    jax.block_until_ready((emb, tok_emb, pos_emb))

    # Pure-JAX reference check.
    ref_tok = jnp.take(tok_table, ids, axis=0)          # (B, T, E)
    ref_pos = pos_table[:T]                             # (T, E)
    ref_emb = ref_tok + ref_pos[None]

    assert emb.shape == (B, T, embDim)
    assert tok_emb.shape == (B, T, embDim)
    assert pos_emb.shape == (T, embDim)
    assert jnp.allclose(tok_emb, ref_tok, atol=1e-5)
    assert jnp.allclose(pos_emb, ref_pos, atol=1e-5)
    assert jnp.allclose(emb, ref_emb, atol=1e-5)

    print("KERNEL_OK")
</pallas_src>

<mosaic_0001>
module attributes {stable_mosaic.version = 11 : i64} {
  func.func @_embedding_gather_kernel(%arg0: i32, %arg1: i32, %arg2: memref<2x8xi32, #tpu.memory_space<smem>>, %arg3: memref<1x1x128xf32, #tpu.memory_space<vmem>>, %arg4: memref<1x1x128xf32, #tpu.memory_space<vmem>>, %arg5: memref<1x1x128xf32, #tpu.memory_space<vmem>>, %arg6: memref<1x1x128xf32, #tpu.memory_space<vmem>>) attributes {dimension_semantics = [#tpu.dimension_semantics<parallel>, #tpu.dimension_semantics<parallel>], iteration_bounds = array<i64: 2, 8>, scalar_prefetch = 1 : i64, scratch_operands = 0 : i64, tpu.core_type = #tpu.core_type<tc>, window_params = [{transform_indices = @transform_0, window_bounds = array<i64: 1, 1, 128>}, {transform_indices = @transform_1, window_bounds = array<i64: 1, 1, 128>}, {transform_indices = @transform_2, window_bounds = array<i64: 1, 1, 128>}, {transform_indices = @transform_3, window_bounds = array<i64: 1, 1, 128>}]} {
    %c0 = arith.constant 0 : index
    %c0_0 = arith.constant 0 : index
    %c0_1 = arith.constant 0 : index
    %0 = vector.load %arg3[%c0, %c0_0, %c0_1] : memref<1x1x128xf32, #tpu.memory_space<vmem>>, vector<1x1x128xf32>
    %c0_2 = arith.constant 0 : index
    %c0_3 = arith.constant 0 : index
    %c0_4 = arith.constant 0 : index
    %1 = vector.load %arg6[%c0_2, %c0_3, %c0_4] : memref<1x1x128xf32, #tpu.memory_space<vmem>>, vector<1x1x128xf32>
    tpu.vector_store %arg6[%c0_2, %c0_3, %c0_4], %0 {strides = array<i32>} : memref<1x1x128xf32, #tpu.memory_space<vmem>>, vector<1x1x128xf32>,
    %c0_5 = arith.constant 0 : index
    %c0_6 = arith.constant 0 : index
    %c0_7 = arith.constant 0 : index
    %2 = vector.load %arg4[%c0_5, %c0_6, %c0_7] : memref<1x1x128xf32, #tpu.memory_space<vmem>>, vector<1x1x128xf32>
    %3 = arith.addf %0, %2 : vector<1x1x128xf32>
    %c0_8 = arith.constant 0 : index
    %c0_9 = arith.constant 0 : index
    %c0_10 = arith.constant 0 : index
    %4 = vector.load %arg5[%c0_8, %c0_9, %c0_10] : memref<1x1x128xf32, #tpu.memory_space<vmem>>, vector<1x1x128xf32>
    tpu.vector_store %arg5[%c0_8, %c0_9, %c0_10], %3 {strides = array<i32>} : memref<1x1x128xf32, #tpu.memory_space<vmem>>, vector<1x1x128xf32>,
    return
  }
  func.func @transform_0(%arg0: i32, %arg1: i32, %arg2: memref<2x8xi32, #tpu.memory_space<smem>>) -> (i32, i32, i32) {
    %0 = arith.index_cast %arg0 : i32 to index
    %1 = arith.index_cast %arg1 : i32 to index
    %2 = memref.load %arg2[%0, %1] : memref<2x8xi32, #tpu.memory_space<smem>>
    %c0_i32 = arith.constant 0 : i32
    %c0_i32_0 = arith.constant 0 : i32
    %c0_i32_1 = arith.constant 0 : i32
    return %2, %c0_i32, %c0_i32_0 : i32, i32, i32
  }
  func.func @transform_1(%arg0: i32, %arg1: i32, %arg2: memref<2x8xi32, #tpu.memory_space<smem>>) -> (i32, i32, i32) {
    %c0_i32 = arith.constant 0 : i32
    %c0_i32_0 = arith.constant 0 : i32
    %c0_i32_1 = arith.constant 0 : i32
    return %arg1, %c0_i32, %c0_i32_0 : i32, i32, i32
  }
  func.func @transform_2(%arg0: i32, %arg1: i32, %arg2: memref<2x8xi32, #tpu.memory_space<smem>>) -> (i32, i32, i32) {
    %c8_i32 = arith.constant 8 : i32
    %0 = arith.muli %arg0, %c8_i32 : i32
    %1 = arith.addi %0, %arg1 : i32
    %c0_i32 = arith.constant 0 : i32
    %c0_i32_0 = arith.constant 0 : i32
    %c0_i32_1 = arith.constant 0 : i32
    return %1, %c0_i32, %c0_i32_0 : i32, i32, i32
  }
  func.func @transform_3(%arg0: i32, %arg1: i32, %arg2: memref<2x8xi32, #tpu.memory_space<smem>>) -> (i32, i32, i32) {
    %c8_i32 = arith.constant 8 : i32
    %0 = arith.muli %arg0, %c8_i32 : i32
    %1 = arith.addi %0, %arg1 : i32
    %c0_i32 = arith.constant 0 : i32
    %c0_i32_0 = arith.constant 0 : i32
    %c0_i32_1 = arith.constant 0 : i32
    return %1, %c0_i32, %c0_i32_0 : i32, i32, i32
  }
}

</mosaic_0001>

<bundles_post_ra>
// kernel: tpu_custom_call.1
= control target key start
LH: loop header
LB: loop body
LE: loop exit
PB: predicated region body
PF: predicated region fallthrough
CT: control target
= control target key end

     0   :  { %s871_s18 = smov [#allocation3]   ;;  %s1229_s0 = inlined_call_operand.hbm [shape: s32[2,8], index: 0, kind: input, shape index: {}]   ;;  %s1230_s1 = inlined_call_operand.hbm [shape: f32[19,1,128], index: 1, kind: input, shape index: {}]   ;;  %s1231_s2 = inlined_call_operand.hbm [shape: f32[16,1,128], index: 2, kind: input, shape index: {}]   ;;  %s1232_s3 = inlined_call_operand.hbm [shape: f32[16,1,128], index: 3, kind: output, shape index: {0}]   ;;  %s1233_s4 = inlined_call_operand.hbm [shape: f32[16,1,128], index: 4, kind: output, shape index: {1}]  }
   0x1   :  { %1246 = sst [smem:[#allocation27_spill]] %s1232_s3  ;;  %s11_s17 = sshll.u32 %s1229_s0, 4  ;;  %s12_s17 = int_to_ptr.hbm [resolvable:$true] %s11_s17 }
   0x2   :  { %1247 = sst [smem:[#allocation28_spill]] %s1233_s4 }
   0x3   :  { %14 = dma.hbm_to_smem %s12_s17, 32, %s871_s18, [#allocation2] }
   0x4   :  { %797 = dma.done.wait [#allocation2], 32 }
   0x5   :  { %798 = vsyncadd [#allocation2], 4294967264 }
   0x6   :  { %17 = sfence }
   0x7   :  { %18 = vsyncpa [#allocation5], 0 }
   0x8   :  { %20 = vsyncpa [#allocation5 + $0x1], 0 }
   0x9   :  { %21 = vsyncpa [#allocation8], 0 }
   0xa   :  { %23 = vsyncpa [#allocation8 + $0x1], 0 }
   0xb   :  { %24 = vsyncpa [#allocation6], 0 }
   0xc   :  { %26 = vsyncpa [#allocation6 + $0x1], 0 }
   0xd   :  { %27 = vsyncpa [#allocation11], 0 }
   0xe   :  { %29 = vsyncpa [#allocation11 + $0x1], 0  ;;  %s900_s19 = smov 0   ;;  %s902_s20 = smov 0  }
   0xf   :  { %s904_s21 = smov 0   ;;  %s906_s0 = smov 0  }
  0x10   :  { %s908_s22 = smov 0   ;;  %s910_s23 = smov 0  }
  0x11   :  { %s912_s24 = smov 0   ;;  %s914_s25 = smov 0  }
  0x12   :  { %s916_s26 = smov 0   ;;  %s918_s27 = smov 0  }
  0x13   :  { %s920_s28 = smov 0   ;;  %s922_s29 = smov 0  }
  0x14   :  { %s924_s30 = smov 0   ;;  %s926_s5 = smov 0  }
  0x15 LB: > { %1248 = sst [smem:[#allocation19_spill]] %s825_s21  ;;  %s1235_s6 = sadd.s32 4294967295, %s869_s5   ;;  %s869_s5 = sphi %s926_s5, %s35_s5   ;;  %s865_s30 = sphi %s924_s30, %s1294_s30   ;;  %s861_s29 = sphi %s922_s29, %s1293_s29   ;;  %s857_s28 = sphi %s920_s28, %s1281_s28   ;;  %s853_s27 = sphi %s918_s27, %s1292_s27   ;;  %s849_s26 = sphi %s916_s26, %s1291_s26   ;;  %s845_s25 = sphi %s914_s25, %s1290_s25   ;;  %s841_s24 = sphi %s912_s24, %s1289_s24   ;;  %s837_s23 = sphi %s910_s23, %s1288_s23   ;;  %s833_s22 = sphi %s908_s22, %s1287_s22   ;;  %s829_s0 = sphi %s906_s0, %s1286_s0   ;;  %s825_s21 = sphi %s904_s21, %s1278_s21   ;;  %s821_s20 = sphi %s902_s20, %s1285_s20   ;;  %s817_s19 = sphi %s900_s19, %s1284_s19  }
  0x16   : > { %1249 = sst [smem:[#allocation20_spill]] %s849_s26  ;;  %s44_s8 = sadd.s32 1, %s861_s29 }
  0x17   : > { %1250 = sst [smem:[#allocation21_spill]] %s865_s30  ;;  %s47_s9 = sadd.s32 1, %s865_s30 }
  0x18   : > { %p45_p0 = scmp.ge.s32.totalorder %s44_s8, 8  ;;  %s51_s10 = sshra.s32 %s861_s29, 7 }
  0x19   : > { %s53_s11 = sadd.s32 %s865_s30, %s51_s10  ;;  %s56_s12 = sand.u32 127, %s861_s29 }
  0x1a   : > { %s1296_s8 = smov (%p45_p0, %s44_s8), 0  ;;  %s1298_s9 = smov (!%p45_p0, %s47_s9), %s865_s30 }
  0x1b   : > { %1251 = sst [smem:[#allocation22_spill]] %s1296_s8  ;;  %s458_s13 = sshll.u32 %s53_s11, 7 }
  0x1c   : > { %s59_s14 = sshra.s32 %s1296_s8, 7  ;;  %p49_p1 = scmp.ge.s32.totalorder %s1298_s9, 2 }
  0x1d   : > { %s981_s15 = sadd.s32 %s458_s13, %s56_s12  ;;  %s64_s17 = sand.u32 127, %s1296_s8 }
  0x1e   : > { %s58_s16 = sld [smem:[#allocation3 + %s981_s15]]  ;;  %s1300_s9 = smov (%p49_p1, %s1298_s9), 0 }
  0x1f   : > { %1252 = sst [smem:[#allocation23_spill]] %s1300_s9  ;;  %s70_s18 = sadd.s32 1, %s849_s26 }
  0x20   : > { %p77_p2 = scmp.ne.s32.totalorder %s849_s26, %s845_s25  ;;  %s61_s10 = sadd.s32 %s59_s14, %s1300_s9 }
  0x21   : > { %p1244_p3 = scmp.eq.s32.totalorder %s869_s5, 0  ;;  %s459_s11 = sshll.u32 %s61_s10, 7 }
  0x22   : > { %p83_p4 = scmp.ne.s32.totalorder %s845_s25, %s841_s24  ;;  %s65_s12 = sadd.s32 %s459_s11, %s64_s17 }
  0x23   : > { %p996_p5 = por %p1244_p3, %p77_p2  ;;  %s66_s7 = sld [smem:[#allocation3 + %s65_s12]] }
  0x24   : > { %p1002_p6 = scmp.eq.s32.totalorder %s1235_s6, 0  ;;  %s460_s14 = sshll.u32 %s865_s30, 3 }
  0x25   : > { %s461_s24 = sshll.u32 %s1300_s9, 3  ;;  %s120_s10 = sadd.s32 %s861_s29, %s460_s14 }
  0x26   : > { %p1010_p7 = por %p1002_p6, %p83_p4  ;;  %s122_s11 = sadd.s32 %s461_s24, %s1296_s8 }
  0x27   : > { %s126_s12 = sadd.s32 1, %s825_s21  ;;  %s123_s6 = ssub.s32 %s120_s10, %s122_s11 }
  0x28   : > { %p136_p8 = scmp.ne.s32.totalorder %s825_s21, %s821_s20  ;;  %p124_p9 = scmp.eq.s32.totalorder %s123_s6, 0 }
  0x29   : > { %s1256_s9 = sadd.s32 4294967295, %s869_s5   ;;  %s67_s30 = ssub.s32 %s58_s16, %s66_s7 }
  0x2a   : > { %p137_p10 = scmp.eq.s32.totalorder %s1256_s9, 15  ;;  %p142_p11 = scmp.ne.s32.totalorder %s821_s20, %s817_s19 }
  0x2b   : > { %p68_p12 = scmp.eq.s32.totalorder %s67_s30, 0  ;;  %s1260_s10 = sadd.s32 4294967294, %s869_s5  }
  0x2c   : > { %p1023_p13 = por %p137_p10, %p136_p8  ;;  %p143_p0 = scmp.eq.s32.totalorder %s1260_s10, 15 }
  0x2d   : > { %s1028_s14 = scalar_select %p124_p9, %s825_s21, %s126_s12  }
  0x2e   : > { %s1031_s24 = scalar_select %p68_p12, %s849_s26, %s70_s18  }
  0x2f   : > { %1258 = sst [smem:[#allocation24_spill]] %s1028_s14  ;;  %p1243_p1 = scmp.lt.s32.totalorder %s869_s5, 16 }
  0x30   : > { %1259 = sst [smem:[#allocation25_spill]] %s1031_s24  ;;  %s193_s6 = sand.u32 1, %s849_s26  }
  0x31   : > { %p1037_p2 = por %p143_p0, %p142_p11  ;;  %p1045_p4 = pnand %p1243_p1, %p996_p5 }
  0x32   : > { %s472_s9 = scalar_select %p996_p5, [#allocation3], [#allocation12] }
  0x33   : > { %s1261_s7 = scalar_select %p1037_p2, 1, 0 }
  0x34   : > { %s1302_s15 = smov (!%p996_p5, %s981_s15), 0  ;;  %s1304_s9 = smov (!%p1243_p1, %s472_s9), [#allocation13] }
  0x35   : > { %1262 = sst [smem:[#allocation26_spill]] %s1261_s7  ;;  %s1306_s15 = smov (!%p1243_p1, %s1302_s15), 0 }
  0x36   : > { %s196_s16 = scalar_lea.vmem [#allocation4], %s193_s6  ;;  %s204_s11 = sld [smem:[%s1304_s9 + %s1306_s15]] }
  0x37   : > { %s211_s18 = sshll.u32 %s196_s16, 4  ;;  %p467_p8 = scmp.ge.s32.totalorder %s869_s5, 1  ;;  %s212_s18 = int_to_ptr.vmem [resolvable:$true] %s211_s18 }
  0x38   : > { %p233_p9 = scmp.lt.s32.totalorder %s869_s5, 17  ;;  %s93_s10 = ssub.s32 %s861_s29, %s1296_s8 }
  0x39   : > { %p1069_p5 = scmp.eq.s32.totalorder %s93_s10, 0  ;;  %s96_s16 = sadd.s32 1, %s837_s23 }
  0x3a   : > { %p1060_p10 = pnand %p467_p8, %p233_p9  ;;  %s194_s15 = scalar_lea.sflag [#allocation5], %s193_s6 }
  0x3b   : > { %p629_p0 = pneg %p1045_p4 }
  0x3c   : > { %s207_s26 = scalar_lea.hbm %s1230_s1, %s204_s11  ;;  %s632_s11 = scalar_lea.hbm %s1230_s1, 19 }
  0x3d   : > { %s209_s21 = sshll.u32 %s207_s26, 4  ;;  %s210_s21 = int_to_ptr.hbm [resolvable:$true] %s209_s21 }
  0x3e   : > { %s625_s9 = sshra.s32 %s210_s21, 4  ;;  %s626_s9 = int_to_ptr.hbm [resolvable:$true] %s625_s9 }
  0x3f   : > { %s627_s7 = scalar_lea.hbm %s626_s9, 1  ;;  %p633_p1 = scmp.lt.s32.totalorder %s626_s9, %s1230_s1 }
  0x40   : > { %p628_p12 = scmp.ne.s32.totalorder %s626_s9, %s627_s7  ;;  %p634_p3 = scmp.lt.s32.totalorder %s632_s11, %s627_s7 }
  0x42   : > { %p630_p8 = pnand %p629_p0, %p628_p12  ;;  %p635_p2 = por %p634_p3, %p633_p1 }
  0x44   : > { %p631_p9 = pneg %p630_p8 }
  0x46   : > { %p636_p11 = pnand %p635_p2, %p631_p9 }
  0x48   : > { %639 = shalt.err (!%p636_p11)
}
  0x49   : > { %487 = dma.hbm_to_vmem [thread:$0]  (!%p1045_p4), %s210_s21, 16, %s212_s18, %s194_s15  }
  0x4a   : > { %s1089_s26 = scalar_select %p1069_p5, %s837_s23, %s96_s16  }
  0x4b   : > { %p1266_p3 = scmp.eq.s32.totalorder %s869_s5, 0  ;;  %p1267_p1 = scmp.ne.s32.totalorder %s837_s23, %s833_s22 }
  0x4c   : > { %p109_p11 = scmp.ne.s32.totalorder %s833_s22, %s829_s0  ;;  %s218_s8 = sand.u32 1, %s837_s23  }
  0x4d   : > { %p105_p2 = por %p1267_p1, %p1266_p3  ;;  %s224_s30 = scalar_lea.hbm %s1231_s2, %s861_s29 }
  0x4e   : > { %p1105_p12 = por %p109_p11, %p1002_p6  ;;  %s226_s24 = sshll.u32 %s224_s30, 4  ;;  %s227_s24 = int_to_ptr.hbm [resolvable:$true] %s226_s24 }
  0x4f   : > { %s221_s21 = scalar_lea.vmem [#allocation7], %s218_s8  ;;  %p1269_p4 = scmp.lt.s32.totalorder %s869_s5, 16 }
  0x50   : > { %s228_s14 = sshll.u32 %s221_s21, 4  ;;  %s219_s18 = scalar_lea.sflag [#allocation8], %s218_s8  ;;  %s229_s14 = int_to_ptr.vmem [resolvable:$true] %s228_s14 }
  0x51   : > { %p488_p5 = pnand %p1269_p4, %p105_p2  ;;  %237 = sbr.rel (%p1060_p10) target bundleno = 127 (0x7f), region = 28 }
  0x52   : > { %s239_s0 = sand.u32 (!%p1060_p10), 1, %s845_s25  }
  0x53   : > { %490 = dma.hbm_to_vmem [thread:$0]  (!%p488_p5), %s227_s24, 16, %s229_s14, %s219_s18  }
  0x54   : > { %s240_s4 = scalar_lea.sflag (!%p1060_p10), [#allocation5], %s239_s0  ;;  %s242_s16 = scalar_lea.vmem (!%p1060_p10), [#allocation4], %s239_s0 }
  0x56   : > { %800 = dma.done.wait (%p1010_p7), %s240_s4, 16  }
  0x57   : > { %802 = vsyncadd (%p1010_p7), %s240_s4, 4294967280  ;;  %s248_s15 = sand.u32 1, %s833_s22  }
  0x58   : > { %s249_s11 = scalar_lea.sflag [#allocation8], %s248_s15  ;;  %s251_s10 = scalar_lea.vmem [#allocation7], %s248_s15 }
  0x59   : > { %804 = dma.done.wait (%p1105_p12), %s249_s11, 16  }
  0x5a   : > { %806 = vsyncadd (%p1105_p12), %s249_s11, 4294967280  ;;  %s1124_s12 = sand.u32 1, %s821_s20   ;;  %s468_s17 = sshll.u32 %s857_s28, 3  ;;  %v293_v0 = vld [vmem:[%s242_s16] sm:$0x1] }
  0x5b   : > { %s280_s13 = scalar_lea.vmem [#allocation10], %s1124_s12  ;;  %s1245_s6 = scalar_lea.vmem [#allocation9], %s1124_s12  ;;  %v295_v1 = vld [vmem:[%s251_s10] sm:$0x1] }
  0x5c   : > { %s1128_s8 = sshll.u32 %s280_s13, 4  ;;  %s1133_s7 = sshll.u32 %s1245_s6, 4  ;;  %294 = vst [vmem:[%s280_s13] sm:$0x1] %v293_v0  ;;  %v296_v2 = vadd.f32 %v295_v1, %v293_v0  ;;  %s331_s8 = int_to_ptr.vmem [resolvable:$true] %s1128_s8  ;;  %s316_s7 = int_to_ptr.vmem [resolvable:$true] %s1133_s7 }
  0x5d   : > { %s310_s30 = sadd.s32 %s853_s27, %s468_s17  ;;  %s1270_s21 = sld [smem:[#allocation27_spill]] }
  0x5e   : > { %s1272_s15 = sld [smem:[#allocation28_spill]]  ;;  %s303_s27 = scalar_lea.sflag [#allocation11], %s1124_s12 }
  0x63   : > { %s1271_s14 = smov %s1270_s21  ;;  %s313_s18 = scalar_lea.hbm %s1270_s21, %s310_s30 }
  0x64   : > { %s1141_s0 = sshll.u32 %s313_s18, 4  ;;  %s328_s11 = scalar_lea.hbm %s1272_s15, %s310_s30  ;;  %s318_s0 = int_to_ptr.hbm [resolvable:$true] %s1141_s0 }
  0x65   : > { %s332_s6 = sshll.u32 %s328_s11, 4  ;;  %s705_s18 = scalar_lea.hbm %s1272_s15, 16  ;;  %s333_s6 = int_to_ptr.hbm [resolvable:$true] %s332_s6 }
  0x66   : > { %s699_s17 = sshra.s32 %s333_s6, 4  ;;  %s700_s17 = int_to_ptr.hbm [resolvable:$true] %s699_s17 }
  0x67   : > { %s701_s9 = scalar_lea.hbm %s700_s17, 1  ;;  %p706_p0 = scmp.lt.s32.totalorder %s700_s17, %s1272_s15 }
  0x68   : > { %p702_p6 = scmp.ne.s32.totalorder %s700_s17, %s701_s9  ;;  %p707_p8 = scmp.lt.s32.totalorder %s705_s18, %s701_s9 }
  0x6a   : > { %p703_p7 = pnand %p702_p6, %p1023_p13  ;;  %p708_p9 = por %p707_p8, %p706_p0 }
  0x6c   : > { %p704_p10 = pneg %p703_p7 }
  0x6e   : > { %p709_p3 = pnand %p708_p9, %p704_p10 }
  0x70   : > { %712 = shalt.err (!%p709_p3)
}
  0x71   : > { %479 = dma.vmem_to_hbm [thread:$0]  (%p1023_p13), %s331_s8, 16, %s333_s6, %s303_s27  }
  0x72   : > { %s1273_s10 = scalar_lea.vmem [#allocation9], %s1124_s12  ;;  %s299_s13 = scalar_lea.sflag [#allocation6], %s1124_s12 }
  0x73   : > { %297 = vst [vmem:[%s1273_s10] sm:$0x1] %v296_v2  ;;  %s727_s28 = sshra.s32 %s318_s0, 4  ;;  %s733_s9 = scalar_lea.hbm %s1271_s14, 16  ;;  %s728_s28 = int_to_ptr.hbm [resolvable:$true] %s727_s28 }
  0x74   : > { %s729_s4 = scalar_lea.hbm %s728_s28, 1  ;;  %p734_p12 = scmp.lt.s32.totalorder %s728_s28, %s1271_s14 }
  0x75   : > { %p730_p1 = scmp.ne.s32.totalorder %s728_s28, %s729_s4  ;;  %p735_p4 = scmp.lt.s32.totalorder %s733_s9, %s729_s4 }
  0x77   : > { %p731_p2 = pnand %p730_p1, %p1023_p13  ;;  %p736_p5 = por %p735_p4, %p734_p12 }
  0x79   : > { %p732_p11 = pneg %p731_p2 }
  0x7b   : > { %p737_p6 = pnand %p736_p5, %p732_p11 }
  0x7d   : > { %740 = shalt.err (!%p737_p6)
}
  0x7e   : > { %478 = dma.vmem_to_hbm [thread:$0]  (%p1023_p13), %s316_s7, 16, %s318_s0, %s299_s13  }
  0x7f PF: > { %s1274_s12 = sld [smem:[#allocation26_spill]]  ;;  %p499_p7 = scmp.ge.s32.totalorder %s869_s5, 2 }
  0x80   : > { %s344_s8 = sand.u32 1, %s817_s19  }
  0x81   : > { %s345_s6 = scalar_lea.sflag [#allocation6], %s344_s8 }
  0x85   : > { %p1275_p10 = scmp.ne.s32.totalorder %s1274_s12, 0 }
  0x87   : > { %p492_p0 = pnand %p499_p7, %p1275_p10 }
  0x89   : > { %p493_p8 = pneg %p492_p0 }
  0x8b   : > { %808 = dma.done.wait (%p493_p8), %s345_s6, 16  }
  0x8c   : > { %810 = vsyncadd (%p493_p8), %s345_s6, 4294967280  ;;  %s354_s27 = scalar_lea.sflag [#allocation11], %s344_s8 }
  0x8d   : > { %812 = dma.done.wait (%p493_p8), %s354_s27, 16  }
  0x8e   : > { %814 = vsyncadd (%p493_p8), %s354_s27, 4294967280  ;;  %s35_s5 = sadd.s32 1, %s869_s5   ;;  %s1277_s7 = sld [smem:[#allocation19_spill]] }
  0x8f   : > { %p1182_p9 = scmp.ge.s32.totalorder %s35_s5, 18   ;;  %s1278_s21 = sld [smem:[#allocation24_spill]] }
  0x90   : > { %s1279_s18 = sld [smem:[#allocation20_spill]]  ;;  %s1284_s19 = smov %s821_s20 }
  0x91   : > { %s1280_s30 = sld [smem:[#allocation25_spill]]  ;;  %s1286_s0 = smov %s833_s22 }
  0x92   : > { %s1281_s28 = sld [smem:[#allocation21_spill]]  ;;  %s1287_s22 = smov %s837_s23 }
  0x93   : > { %s1282_s16 = sld [smem:[#allocation22_spill]]  ;;  %s1288_s23 = smov %s1089_s26 }
  0x94   : > { %s1283_s10 = sld [smem:[#allocation23_spill]]  ;;  %s1285_s20 = smov %s1277_s7 }
  0x95   : > { %s1289_s24 = smov %s845_s25  ;;  %s1292_s27 = smov %s861_s29 }
  0x96   : > { %s1290_s25 = smov %s1279_s18  ;;  %34 = sbr.rel (!%p1182_p9) target bundleno = 21 (0x15), region = 103 }
  0x97   : > { %s1291_s26 = smov %s1280_s30 }
  0x99   : > { %s1293_s29 = smov %s1282_s16 }
  0x9a   : > { %s1294_s30 = smov %s1283_s10 }
  0x9b   :  { %359 = vsyncpa [#allocation5], 1 }
  0x9c   :  { %361 = vsyncpa [#allocation5 + $0x1], 1 }
  0x9d   :  { %362 = vsyncpa [#allocation8], 1 }
  0x9e   :  { %364 = vsyncpa [#allocation8 + $0x1], 1 }
  0x9f   :  { %365 = vsyncpa [#allocation6], 1 }
  0xa0   :  { %367 = vsyncpa [#allocation6 + $0x1], 1 }
  0xa1   :  { %368 = vsyncpa [#allocation11], 1 }
  0xa2   :  { %370 = vsyncpa [#allocation11 + $0x1], 1 }

</bundles_post_ra>
